<compile_context>
chip_gen: v7x
topology: tpu7x:2x2x1
jax: 0.10.0
libtpu: 0.0.40
codegen_flags: <defaults>
</compile_context>

<pallas_src>
import functools
import math

import jax
import jax.numpy as jnp
from jax import lax
from jax.experimental import pallas as pl
from jax.experimental.pallas import tpu as pltpu

_LANE = 128
_SUB = 8
_SMALL_BYTES = 256 * 1024          # below this: single block, no splitting


def _round_up(a: int, m: int) -> int:
    return ((a + m - 1) // m) * m


def _cdiv(a: int, b: int) -> int:
    return -(-a // b)


def _dropout_kernel(seed_ref, x_ref, o_ref, *, threshold31: int, width: int):
    """out = where(hash(seed, h*W + w) high-bits >= threshold, x, 0)."""
    _, th, tw = x_ref.shape
    hi = pl.program_id(1)
    wi = pl.program_id(2)

    # Global (h, w) pixel coordinates covered by this block, shape (1, th, tw).
    row = lax.broadcasted_iota(jnp.int32, (1, th, tw), 1) + hi * th
    col = lax.broadcasted_iota(jnp.int32, (1, th, tw), 2) + wi * tw
    gidx = row.astype(jnp.uint32) * jnp.uint32(width) + col.astype(jnp.uint32)

    # Counter-based hash PRNG (lowbias32 finalizer) keyed on (seed, pixel idx).
    z = gidx ^ (seed_ref[0].astype(jnp.uint32) * jnp.uint32(0x9E3779B9))
    z = z ^ (z >> 16)
    z = z * jnp.uint32(0x7FEB352D)
    z = z ^ (z >> 15)
    z = z * jnp.uint32(0x846CA68B)
    z = z ^ (z >> 16)

    # Top 31 bits as a non-negative int32 uniform in [0, 2^31); keep iff
    # >= ceil(p * 2^31)  (matches `rand > p`: keep-prob = 1 - p).
    keep = (z >> 1).astype(jnp.int32) >= jnp.int32(threshold31)   # (1, th, tw)

    # Broadcast the per-pixel mask over the channel axis (mask is independent
    # of the channel block index, so it is shared across all channels).
    o_ref[...] = jnp.where(keep, x_ref[...], jnp.zeros((), dtype=x_ref.dtype))


def _vmem_capacity_bytes() -> int:
    """Generation-aware VMEM capacity; conservative fallback (v7x per-TC)."""
    try:
        return int(pltpu.get_tpu_info().vmem_capacity_bytes)
    except Exception:
        return 64 * 1024 * 1024


def _choose_block(c: int, h: int, w: int, itemsize: int, block_max: int):
    """Largest (tc, th, tw) block whose padded VMEM footprint fits block_max.

    Respects the (8, 128) rule: th is a multiple of 8 or == h, tw is a
    multiple of 128 or == w.  tc (leading dim) is unconstrained.
    """
    def vmem_bytes(tc, th, tw):
        return tc * _round_up(th, _SUB) * _round_up(tw, _LANE) * itemsize

    tc, th, tw = c, h, w

    if vmem_bytes(tc, th, tw) <= block_max:
        # Whole array fits in one block.  Unless tiny, split once so both
        # v7x TensorCores get a grid step (parallel dimension semantics).
        if c * h * w * itemsize > _SMALL_BYTES:
            if h > _SUB:
                th = min(h, _round_up(_cdiv(h, 2), _SUB))
            elif w > _LANE:
                tw = min(w, _round_up(_cdiv(w, 2), _LANE))
            elif c > 1:
                tc = _cdiv(c, 2)
        return tc, th, tw

    # Need to tile.  Prefer full-width (lane-dense) rows, tiling over H.
    th = h if h <= _SUB else _SUB
    if vmem_bytes(tc, th, tw) <= block_max:
        if h > _SUB:
            th = (block_max // (tc * _round_up(tw, _LANE) * itemsize)) // _SUB * _SUB
            th = max(_SUB, min(th, h))
        return tc, th, tw

    # Rows too wide even at 8 sublanes: tile over W as well.
    tw = _LANE if w > _LANE else w
    if vmem_bytes(tc, th, tw) <= block_max:
        if w > _LANE:
            tw = (block_max // (tc * _round_up(th, _SUB) * itemsize)) // _LANE * _LANE
            tw = max(_LANE, min(tw, w))
        return tc, th, tw

    # Still too big (very large C): tile the channel axis too.
    tc = max(1, block_max // (_round_up(th, _SUB) * _round_up(tw, _LANE) * itemsize))
    return tc, th, tw


def dropout_forward(x: jax.Array, seed: int, p: float) -> jax.Array:
    """Applies per-pixel dropout to a (C, H, W) array with keep-prob (1 - p)."""
    c, h, w = (int(d) for d in x.shape)
    itemsize = jnp.dtype(x.dtype).itemsize

    cap = _vmem_capacity_bytes()
    # Pipeline footprint (in+out, double-buffered) allowance and per-block cap.
    budget_total = min(cap // 2, 48 * 1024 * 1024)
    block_max = budget_total // 4
    vmem_limit = int(min(3 * cap // 4, 64 * 1024 * 1024))

    tc, th, tw = _choose_block(c, h, w, itemsize, block_max)
    tc, th, tw = int(tc), int(th), int(tw)
    grid = (_cdiv(c, tc), _cdiv(h, th), _cdiv(w, tw))

    threshold31 = min(int(math.ceil(float(p) * (2.0 ** 31))), 2 ** 31 - 1)
    kernel = functools.partial(_dropout_kernel, threshold31=threshold31, width=w)
    seed_arr = jnp.asarray([seed], dtype=jnp.int32)

    return pl.pallas_call(
        kernel,
        out_shape=jax.ShapeDtypeStruct((c, h, w), x.dtype),
        grid=grid,
        in_specs=[
            pl.BlockSpec(memory_space=pltpu.SMEM),                       # seed scalar
            pl.BlockSpec((tc, th, tw), lambda ci, hi, wi: (ci, hi, wi)),  # x block
        ],
        out_specs=pl.BlockSpec((tc, th, tw), lambda ci, hi, wi: (ci, hi, wi)),
        compiler_params=pltpu.CompilerParams(
            dimension_semantics=("parallel", "parallel", "parallel"),
            vmem_limit_bytes=vmem_limit,
        ),
    )(seed_arr, x)


class DropoutPallas:
    """Mirror of the PyTorch module.

    The PyTorch __init__ draws p from the tuple range with Python's random();
    here we use the midpoint of the range so the parameter is reproducible.
    No 1/(1-p) rescaling is applied, matching the custom module (not nn.Dropout).
    """

    def __init__(self, p=(0.0, 0.05)):
        if isinstance(p, tuple):
            # TODO(synk): deterministic stand-in for `(p[1]-p[0])*random() + p[0]`.
            self.p = 0.5 * (p[0] + p[1])
        else:
            self.p = p

    def __call__(self, x: jax.Array, seed: int = 0) -> jax.Array:
        return dropout_forward(x, seed, self.p)


if __name__ == "__main__":
    key = jax.random.PRNGKey(0)
    k1, k2 = jax.random.split(key)

    # --- primary demo: tiny (C, H, W) image, exercises the single-block path.
    C, H, W = 4, 16, 16
    x = jax.random.uniform(k1, (C, H, W), dtype=jnp.float32,
                           minval=0.25, maxval=1.0)   # strictly positive
    module = DropoutPallas(p=(0.0, 0.05))
    out = jax.block_until_ready(module(x, seed=0))

    assert out.shape == x.shape and out.dtype == x.dtype
    kept = out != 0
    assert bool(jnp.all(kept == kept[0:1, :, :]))               # mask shared over C
    assert bool(jnp.all(jnp.where(kept, out == x, out == 0)))   # kept exactly or zeroed

    # --- secondary check: larger array with heavy dropout, exercises the
    # split / tiled grid and partial edge blocks (H not divisible by the tile).
    C2, H2, W2 = 8, 100, 160
    x2 = jax.random.uniform(k2, (C2, H2, W2), dtype=jnp.float32,
                            minval=0.25, maxval=1.0)
    out2 = jax.block_until_ready(dropout_forward(x2, seed=123, p=0.5))

    assert out2.shape == x2.shape and out2.dtype == x2.dtype
    kept2 = out2 != 0
    assert bool(jnp.all(kept2 == kept2[0:1, :, :]))
    assert bool(jnp.all(jnp.where(kept2, out2 == x2, out2 == 0)))
    drop_frac = 1.0 - float(jnp.mean(kept2[0].astype(jnp.float32)))
    assert 0.4 < drop_frac < 0.6, drop_frac

    print("KERNEL_OK")
</pallas_src>

<mosaic_0001>
module attributes {stable_mosaic.version = 11 : i64} {
  func.func @_dropout_kernel(%arg0: i32, %arg1: i32, %arg2: i32, %arg3: memref<1xi32, #tpu.memory_space<smem>>, %arg4: memref<4x16x16xf32, #tpu.memory_space<vmem>>, %arg5: memref<4x16x16xf32, #tpu.memory_space<vmem>>) attributes {dimension_semantics = [#tpu.dimension_semantics<parallel>, #tpu.dimension_semantics<parallel>, #tpu.dimension_semantics<parallel>], iteration_bounds = array<i64: 1, 1, 1>, scalar_prefetch = 0 : i64, scratch_operands = 0 : i64, tpu.core_type = #tpu.core_type<tc>, window_params = [{transform_indices = @transform_0, window_bounds = array<i64: 1>}, {transform_indices = @transform_1, window_bounds = array<i64: 4, 16, 16>}, {transform_indices = @transform_2, window_bounds = array<i64: 4, 16, 16>}]} {
    %0 = tpu.iota {dimensions = array<i32: 1>} : vector<1x16x16xi32>
    %c16_i32 = arith.constant 16 : i32
    %1 = arith.muli %arg1, %c16_i32 : i32
    %2 = vector.broadcast %1 : i32 to vector<1x16x16xi32>
    %3 = arith.addi %0, %2 : vector<1x16x16xi32>
    %4 = tpu.iota {dimensions = array<i32: 2>} : vector<1x16x16xi32>
    %c16_i32_0 = arith.constant 16 : i32
    %5 = arith.muli %arg2, %c16_i32_0 : i32
    %6 = vector.broadcast %5 : i32 to vector<1x16x16xi32>
    %7 = arith.addi %4, %6 : vector<1x16x16xi32>
    %c16_i32_1 = arith.constant 16 : i32
    %8 = vector.broadcast %c16_i32_1 : i32 to vector<1x16x16xi32>
    %9 = arith.muli %3, %8 : vector<1x16x16xi32>
    %10 = arith.addi %9, %7 : vector<1x16x16xi32>
    %c0 = arith.constant 0 : index
    %11 = memref.load %arg3[%c0] : memref<1xi32, #tpu.memory_space<smem>>
    %c-1640531527_i32 = arith.constant -1640531527 : i32
    %12 = arith.muli %11, %c-1640531527_i32 : i32
    %13 = vector.broadcast %12 : i32 to vector<1x16x16xi32>
    %14 = arith.xori %10, %13 : vector<1x16x16xi32>
    %c16_i32_2 = arith.constant 16 : i32
    %15 = vector.broadcast %c16_i32_2 : i32 to vector<1x16x16xi32>
    %16 = arith.shrui %14, %15 : vector<1x16x16xi32>
    %17 = arith.xori %14, %16 : vector<1x16x16xi32>
    %c2146121005_i32 = arith.constant 2146121005 : i32
    %18 = vector.broadcast %c2146121005_i32 : i32 to vector<1x16x16xi32>
    %19 = arith.muli %17, %18 : vector<1x16x16xi32>
    %c15_i32 = arith.constant 15 : i32
    %20 = vector.broadcast %c15_i32 : i32 to vector<1x16x16xi32>
    %21 = arith.shrui %19, %20 : vector<1x16x16xi32>
    %22 = arith.xori %19, %21 : vector<1x16x16xi32>
    %c-2073254261_i32 = arith.constant -2073254261 : i32
    %23 = vector.broadcast %c-2073254261_i32 : i32 to vector<1x16x16xi32>
    %24 = arith.muli %22, %23 : vector<1x16x16xi32>
    %c16_i32_3 = arith.constant 16 : i32
    %25 = vector.broadcast %c16_i32_3 : i32 to vector<1x16x16xi32>
    %26 = arith.shrui %24, %25 : vector<1x16x16xi32>
    %27 = arith.xori %24, %26 : vector<1x16x16xi32>
    %c1_i32 = arith.constant 1 : i32
    %28 = vector.broadcast %c1_i32 : i32 to vector<1x16x16xi32>
    %29 = arith.shrui %27, %28 : vector<1x16x16xi32>
    %c53687092_i32 = arith.constant 53687092 : i32
    %30 = vector.broadcast %c53687092_i32 : i32 to vector<1x16x16xi32>
    %31 = arith.cmpi sge, %29, %30 : vector<1x16x16xi32>
    %c0_4 = arith.constant 0 : index
    %c0_5 = arith.constant 0 : index
    %c0_6 = arith.constant 0 : index
    %32 = vector.load %arg4[%c0_4, %c0_5, %c0_6] : memref<4x16x16xf32, #tpu.memory_space<vmem>>, vector<4x16x16xf32>
    %cst = arith.constant 0.000000e+00 : f32
    %33 = vector.shape_cast %31 : vector<1x16x16xi1> to vector<1x16x16xi1>
    %34 = vector.broadcast %33 : vector<1x16x16xi1> to vector<4x16x16xi1>
    %35 = vector.broadcast %cst : f32 to vector<4x16x16xf32>
    %36 = arith.select %34, %32, %35 : vector<4x16x16xi1>, vector<4x16x16xf32>
    %c0_7 = arith.constant 0 : index
    %c0_8 = arith.constant 0 : index
    %c0_9 = arith.constant 0 : index
    %37 = vector.load %arg5[%c0_7, %c0_8, %c0_9] : memref<4x16x16xf32, #tpu.memory_space<vmem>>, vector<4x16x16xf32>
    tpu.vector_store %arg5[%c0_7, %c0_8, %c0_9], %36 {strides = array<i32>} : memref<4x16x16xf32, #tpu.memory_space<vmem>>, vector<4x16x16xf32>,
    return
  }
  func.func @transform_0(%arg0: i32, %arg1: i32, %arg2: i32) -> i32 {
    %c0_i32 = arith.constant 0 : i32
    %c0_i32_0 = arith.constant 0 : i32
    return %c0_i32 : i32
  }
  func.func @transform_1(%arg0: i32, %arg1: i32, %arg2: i32) -> (i32, i32, i32) {
    %c0_i32 = arith.constant 0 : i32
    return %arg0, %arg1, %arg2 : i32, i32, i32
  }
  func.func @transform_2(%arg0: i32, %arg1: i32, %arg2: i32) -> (i32, i32, i32) {
    %c0_i32 = arith.constant 0 : i32
    return %arg0, %arg1, %arg2 : i32, i32, i32
  }
}

</mosaic_0001>

<bundles_post_ra>
// kernel: tpu_custom_call.1
= control target key start
LH: loop header
LB: loop body
LE: loop exit
PB: predicated region body
PF: predicated region fallthrough
CT: control target
= control target key end

     0   :  { %8 = vsyncpa [#allocation4], 0  ;;  %s226_s0 = inlined_call_operand.<no memory space> [shape: s32[1], index: 0, kind: input, shape index: {}]   ;;  %s227_s1 = inlined_call_operand.hbm [shape: f32[4,16,16], index: 1, kind: input, shape index: {}]   ;;  %s228_s2 = inlined_call_operand.hbm [shape: f32[4,16,16], index: 2, kind: output, shape index: {}]  }
   0x1   :  { %9 = vsyncpa [#allocation5], 0  ;;  %s166_s9 = smov [#allocation3]   ;;  %s118_s13 = scalar_lea.hbm %s227_s1, 1024 }
   0x2   :  { %s17_s10 = sshll.u32 %s166_s9, 4  ;;  %p119_p0 = scmp.ne.s32.totalorder %s227_s1, %s118_s13  ;;  %s18_s10 = int_to_ptr.vmem [resolvable:$true] %s17_s10 }
   0x3   :  { %p122_p1 = scmp.lt.u32.totalorder %s118_s13, %s227_s1 }
   0x5   :  { %p124_p2 = pnand %p122_p1, %p119_p0 }
   0x7   :  { %127 = shalt.err (!%p124_p2)
}
   0x8   :  { %s128_s18 = scalar_lea.vmem %s18_s10, 1024  ;;  %p133_p4 = scmp.lt.s32.totalorder %s18_s10, %s18_s10 }
   0x9   :  { %p129_p3 = scmp.ne.s32.totalorder %s18_s10, %s128_s18  ;;  %p134_p5 = scmp.lt.s32.totalorder %s128_s18, %s128_s18 }
   0xb   :  { %p135_p6 = por %p134_p5, %p133_p4 }
   0xd   :  { %p136_p7 = pnand %p135_p6, %p129_p3 }
   0xf   :  { %139 = shalt.err (!%p136_p7)
}
  0x10   :  { %s167_s19 = smov 128   ;;  %s168_s20 = smov 8  }
  0x11   :  { %23 = dma.hbm_to_vmem [thread:$0]  %s227_s1, 1024, %s18_s10, [#allocation4], %s167_s19, %s167_s19, %s168_s20  }
  0x12   :  { %162 = dma.done.wait [#allocation4], 1024  }
  0x13   :  { %163 = vsyncadd [#allocation4], 4294966272  ;;  %v27_v0 = vlaneseq  ;;  %s44_s25 = smul.u32 2654435769, %s226_s0  ;;  %v68_v26 = vld [vmem:[#allocation3] sm:$0xff]  ;;  %v70_v29 = vld [vmem:[#allocation3 + $0x10] sm:$0xff] }
  0x14   :  { %v72_v30 = vld [vmem:[#allocation3 + $0x20] sm:$0xff]  ;;  %v74_v31 = vld [vmem:[#allocation3 + $0x30] sm:$0xff]  ;;  %vm88_vm0 = vcmask 130048   ;;  %v69_v32 = vld [vmem:[#allocation3 + $0x8] sm:$0xff]  ;;  %s169_s0 = smov [#allocation6]  }
  0x15   :  { %v28_v1 = vshrl.u32 %v27_v0, 7  ;;  %v35_v2 = vand.u32 127, %v27_v0  ;;  %v45_v5 = vstv %s44_s25  ;;  %s102_s1 = sshll.u32 %s169_s0, 4  ;;  %v71_v34 = vld [vmem:[#allocation3 + $0x18] sm:$0xff]  ;;  %v73_v35 = vld [vmem:[#allocation3 + $0x28] sm:$0xff]  ;;  %s103_s1 = int_to_ptr.vmem [resolvable:$true] %s102_s1 }
  0x16   :  { %v75_v36 = vld [vmem:[#allocation3 + $0x38] sm:$0xff]  ;;  %s140_s26 = scalar_lea.vmem %s103_s1, 1024  ;;  %p145_p9 = scmp.lt.s32.totalorder %s103_s1, %s103_s1 }
  0x17   :  { %v39_v3 = vmul.u32 16, %v28_v1  ;;  %v29_v4 = vadd.s32 8, %v28_v1  ;;  %p141_p8 = scmp.ne.s32.totalorder %s103_s1, %s140_s26  ;;  %p146_p10 = scmp.lt.s32.totalorder %s140_s26, %s140_s26 }
  0x19   :  { %v41_v6 = vadd.s32 %v39_v3, %v35_v2  ;;  %v40_v7 = vmul.u32 16, %v29_v4  ;;  %p147_p11 = por %p146_p10, %p145_p9 }
  0x1b   :  { %v46_v8 = vxor.u32 %v45_v5, %v41_v6  ;;  %v42_v9 = vadd.s32 %v40_v7, %v35_v2  ;;  %p148_p12 = pnand %p147_p11, %p141_p8 }
  0x1d   :  { %v48_v10 = vshrl.u32 %v46_v8, 16  ;;  %v47_v11 = vxor.u32 %v45_v5, %v42_v9 }
  0x1f   :  { %v50_v12 = vxor.u32 %v48_v10, %v46_v8  ;;  %v49_v13 = vshrl.u32 %v47_v11, 16 }
  0x21   :  { %v52_v14 = vmul.u32 2146121005, %v50_v12  ;;  %v51_v15 = vxor.u32 %v49_v13, %v47_v11 }
  0x23   :  { %v54_v16 = vshrl.u32 %v52_v14, 15  ;;  %v53_v17 = vmul.u32 2146121005, %v51_v15 }
  0x25   :  { %v56_v18 = vxor.u32 %v54_v16, %v52_v14  ;;  %v55_v19 = vshrl.u32 %v53_v17, 15 }
  0x27   :  { %v58_v20 = vmul.u32 2221713035, %v56_v18  ;;  %v57_v21 = vxor.u32 %v55_v19, %v53_v17 }
  0x29   :  { %v60_v22 = vshrl.u32 %v58_v20, 16  ;;  %v59_v23 = vmul.u32 2221713035, %v57_v21 }
  0x2b   :  { %v62_v24 = vxor.u32 %v60_v22, %v58_v20  ;;  %v61_v25 = vshrl.u32 %v59_v23, 16 }
  0x2d   :  { %v64_v27 = vshrl.u32 %v62_v24, 1  ;;  %v63_v28 = vxor.u32 %v61_v25, %v59_v23 }
  0x2f   :  { %vm66_vm1 = vcmp.ge.s32.totalorder %v64_v27, 53687092  ;;  %v65_v33 = vshrl.u32 %v63_v28, 1 }
  0x30   :  { %v80_v37 = vsel %vm66_vm1, %v68_v26, 0.0  ;;  %v82_v38 = vsel %vm66_vm1, %v70_v29, 0.0  ;;  %v84_v39 = vsel %vm66_vm1, %v72_v30, 0.0  ;;  %v86_v40 = vsel %vm66_vm1, %v74_v31, 0.0 }
  0x31   :  { %89 = vst.msk [vmem:[#allocation6] sm:$0xff] %vm88_vm0, %v80_v37  ;;  %vm67_vm2 = vcmp.ge.s32.totalorder %v65_v33, 53687092  ;;  %91 = vst.msk [vmem:[#allocation6 + $0x10] sm:$0xff] %vm88_vm0, %v82_v38 }
  0x32   :  { %93 = vst.msk [vmem:[#allocation6 + $0x20] sm:$0xff] %vm88_vm0, %v84_v39  ;;  %95 = vst.msk [vmem:[#allocation6 + $0x30] sm:$0xff] %vm88_vm0, %v86_v40  ;;  %v81_v41 = vsel %vm67_vm2, %v69_v32, 0.0  ;;  %v83_v42 = vsel %vm67_vm2, %v71_v34, 0.0  ;;  %v85_v43 = vsel %vm67_vm2, %v73_v35, 0.0  ;;  %v87_v44 = vsel %vm67_vm2, %v75_v36, 0.0 }
  0x33   :  { %90 = vst.msk [vmem:[#allocation6 + $0x8] sm:$0xff] %vm88_vm0, %v81_v41  ;;  %92 = vst.msk [vmem:[#allocation6 + $0x18] sm:$0xff] %vm88_vm0, %v83_v42 }
  0x34   :  { %94 = vst.msk [vmem:[#allocation6 + $0x28] sm:$0xff] %vm88_vm0, %v85_v43  ;;  %96 = vst.msk [vmem:[#allocation6 + $0x38] sm:$0xff] %vm88_vm0, %v87_v44 }
  0x35   :  { %151 = shalt.err (!%p148_p12)
}
  0x36   :  { %s152_s29 = scalar_lea.hbm %s228_s2, 1024 }
  0x37   :  { %p153_p13 = scmp.ne.s32.totalorder %s228_s2, %s152_s29  ;;  %p156_p0 = scmp.lt.u32.totalorder %s152_s29, %s228_s2 }
  0x39   :  { %p158_p1 = pnand %p156_p0, %p153_p13 }
  0x3b   :  { %161 = shalt.err (!%p158_p1)
}
  0x3c   :  { %108 = dma.vmem_to_hbm [thread:$0]  %s103_s1, 1024, %s228_s2, [#allocation5], %s167_s19, %s167_s19, %s168_s20  }
  0x3d   :  { %164 = dma.done.wait [#allocation5], 1024  }
  0x3e   :  { %165 = vsyncadd [#allocation5], 4294966272 }
  0x3f   :  { %112 = vsyncpa [#allocation4], 1 }
  0x40   :  { %113 = vsyncpa [#allocation5], 1 }

</bundles_post_ra>
